<compile_context>
chip_gen: v6e
topology: v6e:2x2x1
jax: 0.10.0
libtpu: 0.0.40
codegen_flags: <defaults>
</compile_context>

<pallas_src>
import functools

import jax
import jax.numpy as jnp
from jax.experimental import pallas as pl
from jax.experimental.pallas import tpu as pltpu


def _elu(x):
    # ELU(alpha=1): x if x > 0 else exp(x) - 1  (exp runs on the EUP slot)
    return jnp.where(x > 0, x, jnp.exp(jnp.minimum(x, 0.0)) - 1.0)


# ----------------------------------------------------------------------------
# Kernel
# ----------------------------------------------------------------------------
def _make_kernel(win_len, L, K):
    def kernel(x_ref, w1p_ref, b1_ref, w2e_ref, b2_ref, cw_ref, bn_ref, out_ref):
        # x_ref: (C, Np) lane-dense slab for one slide window,
        # Np = round_up_to_128(B * H * win_len); tail columns are zero padding.
        C, Np = x_ref.shape

        x = x_ref[...]

        # ---- SqueezeExpand2D (temporal branch) on the VPU/XLU ----
        # The (C,H) average pool, the per-h broadcast and the batch
        # block-diagonal structure are folded into w1p/w2e outside the
        # kernel, so squeeze and expand are broadcast multiplies plus
        # lane / sublane reductions (no tiny MXU dots, no (N, 8) blocks).
        m1 = jnp.mean(x, axis=0, keepdims=True)                              # (1, Np)
        s = jnp.sum(w1p_ref[...] * m1, axis=1, keepdims=True) + b1_ref[...]  # (B*sd, 1)
        s = jnp.maximum(s, 0.0)                                              # ReLU
        e = jnp.sum(w2e_ref[...] * s, axis=0, keepdims=True) + b2_ref[...]   # (1, Np)
        se = x * jax.nn.sigmoid(e)                                           # (C, Np)

        # column index within each temporal row (causal mask for the rolls)
        col = jax.lax.broadcasted_iota(jnp.int32, (C, Np), 1) % win_len

        # ---- stacked causal dilated convolutions, residual with SE output ----
        a = se
        for l in range(L):                 # dilation rate d = l + 1
            d = l + 1
            z = None
            for t in range(K):
                sh = (K - 1 - t) * d       # static per (l, t)
                if sh == 0:
                    tap = a
                else:
                    # in-vreg causal shift: lane roll (XLU) + mask.  Wrapped
                    # lanes only land where col < sh, which the mask zeroes,
                    # so this equals the zero-padded slab shift.
                    tap = jnp.where(col >= sh, pltpu.roll(a, shift=sh, axis=1), 0.0)
                zt = jnp.dot(cw_ref[l, t], tap,
                             preferred_element_type=jnp.float32)             # (C, Np)
                z = zt if z is None else z + zt
            # eval-mode BatchNorm with conv bias folded in, then ELU
            bn = bn_ref[l]                                                   # (C, 2)
            z = _elu(z * bn[:, 0:1] + bn[:, 1:2])
            # residual add with squeeze-expansion output, then ELU
            a = _elu(z + se)

        out_ref[...] = a                   # lane-dense (C, Np) store

    return kernel


# ----------------------------------------------------------------------------
# Parameter folding (exact linear algebra, done outside the kernel)
# ----------------------------------------------------------------------------
def _fold_se(w1, b1, w2, b2, *, B, H):
    """Fold the (C,H)-avg-pool, h-broadcast and batch block-diagonal structure
    into the SE Linear weights, with the long (column) dim last.

    w1: (sd, Wn), b1: (sd,), w2: (Wn, sd), b2: (Wn,)  (PyTorch Linear layout)
    Returns w1p (B*sd, B*H*Wn), b1c (B*sd, 1), w2e (B*sd, B*H*Wn), b2e (1, B*H*Wn)
    such that, with m1[n] = mean_c x[c, n] and n = b*H*Wn + h*Wn + w:
        s    = relu(sum_n w1p[:, n] * m1[n] + b1c)            # (B*sd, 1)
        gate = sigmoid(sum_q w2e[q, :] * s[q] + b2e)          # (1, B*H*Wn)
    equals the per-(b, w) SqueezeExpand gate broadcast over h (and channels).
    """
    sd, Wn = w1.shape
    eyeB = jnp.eye(B, dtype=jnp.float32)

    # squeeze map: [b*sd+q, b'*H*Wn + h*Wn + w] = delta(b,b') * w1[q, w] / H
    sq_core = eyeB[:, None, :, None] * w1[None, :, None, :]          # (B, sd, B, Wn)
    w1p = (jnp.broadcast_to(sq_core[:, :, :, None, :], (B, sd, B, H, Wn))
           .reshape(B * sd, B * H * Wn)) / H
    b1c = jnp.tile(b1, B).reshape(B * sd, 1)

    # expand map: [b*sd+q, b'*H*Wn + h*Wn + w] = delta(b,b') * w2[w, q]
    ex_core = eyeB[:, None, :, None] * w2.T[None, :, None, :]        # (B, sd, B, Wn)
    w2e = jnp.broadcast_to(ex_core[:, :, :, None, :],
                           (B, sd, B, H, Wn)).reshape(B * sd, B * H * Wn)
    b2e = jnp.tile(b2, B * H).reshape(1, B * H * Wn)
    return w1p, b1c, w2e, b2e


def init_params(key, dilate_layers, dilate_kernel_size, slide_windows,
                slide_step, num_channels, input_length, squeeze_dim):
    L, K, C = dilate_layers, dilate_kernel_size, num_channels
    win_len = input_length - (slide_windows - 1) * slide_step
    keys = jax.random.split(key, 5)

    conv_w = jax.random.normal(keys[0], (L, K, C, C), jnp.float32) / jnp.sqrt(C * K)
    conv_b = 0.05 * jax.random.normal(keys[1], (L, C), jnp.float32)

    gamma = 1.0 + 0.1 * jax.random.normal(keys[2], (L, C), jnp.float32)
    beta = 0.1 * jax.random.normal(keys[3], (L, C), jnp.float32)
    running_mean = jnp.zeros((L, C), jnp.float32)
    running_var = jnp.ones((L, C), jnp.float32)
    eps = 1e-5
    bn_scale = gamma / jnp.sqrt(running_var + eps)
    bn_shift = beta - running_mean * bn_scale

    # fixed deterministic per-window SqueezeExpand2D parameters
    se = []
    for i in range(slide_windows):
        k = jax.random.fold_in(keys[4], i)
        k1, k2, k3, k4 = jax.random.split(k, 4)
        w1 = jax.random.normal(k1, (squeeze_dim, win_len), jnp.float32) / jnp.sqrt(win_len)
        b1 = 0.05 * jax.random.normal(k2, (squeeze_dim,), jnp.float32)
        w2 = jax.random.normal(k3, (win_len, squeeze_dim), jnp.float32) / jnp.sqrt(squeeze_dim)
        b2 = 0.05 * jax.random.normal(k4, (win_len,), jnp.float32)
        se.append((w1, b1, w2, b2))

    return dict(conv_w=conv_w, conv_b=conv_b,
                bn_scale=bn_scale, bn_shift=bn_shift, se=se)


# ----------------------------------------------------------------------------
# Forward wrapper: single pallas_call over all windows + the whole batch
# ----------------------------------------------------------------------------
def dilated_conv2d_forward(x, params, *, slide_windows, slide_step, input_length):
    # x layout: NCHW = (B, num_channels, H, input_length), like PyTorch.
    B, C, H, _ = x.shape
    conv_w = params["conv_w"]
    L, K = conv_w.shape[0], conv_w.shape[1]
    win_len = input_length - (slide_windows - 1) * slide_step
    N = B * H * win_len
    Np = ((N + 127) // 128) * 128          # lane-dense slab width (multiple of 128)
    pad = Np - N

    # layout plumbing: lane-dense per-window input slabs (C, Np), zero-padded tail
    slabs = []
    for i in range(slide_windows):
        start = i * slide_step
        xw = jax.lax.slice_in_dim(x, start, start + win_len, axis=3)   # (B,C,H,Wn)
        slabs.append(jnp.transpose(xw, (1, 0, 2, 3)).reshape(C, N))
    x_wins = jnp.pad(jnp.stack(slabs, axis=0), ((0, 0), (0, 0), (0, pad)))  # (SW,C,Np)

    # per-window SE params folded with pool / h-broadcast maps (long dim last)
    folded = [_fold_se(*params["se"][i], B=B, H=H) for i in range(slide_windows)]
    w1p = jnp.pad(jnp.stack([f[0] for f in folded]), ((0, 0), (0, 0), (0, pad)))  # (SW,B*sd,Np)
    b1c = jnp.stack([f[1] for f in folded])                                       # (SW,B*sd,1)
    w2e = jnp.pad(jnp.stack([f[2] for f in folded]), ((0, 0), (0, 0), (0, pad)))  # (SW,B*sd,Np)
    b2e = jnp.pad(jnp.stack([f[3] for f in folded]), ((0, 0), (0, 0), (0, pad)))  # (SW,1,Np)
    Bsd = b1c.shape[1]

    # conv weights (L, K, C_out, C_in); BN scale + (conv-bias-folded) shift packed
    cw = conv_w                                                        # (L, K, C, C)
    bn = jnp.stack([params["bn_scale"],
                    params["conv_b"] * params["bn_scale"] + params["bn_shift"]],
                   axis=-1)                                            # (L, C, 2)

    grid_spec = pltpu.PrefetchScalarGridSpec(
        num_scalar_prefetch=0,
        grid=(slide_windows,),
        in_specs=[
            pl.BlockSpec((pl.Squeezed(), C, Np), lambda w: (w, 0, 0)),     # x slab
            pl.BlockSpec((pl.Squeezed(), Bsd, Np), lambda w: (w, 0, 0)),   # SE squeeze (folded)
            pl.BlockSpec((pl.Squeezed(), Bsd, 1), lambda w: (w, 0, 0)),    # SE squeeze bias
            pl.BlockSpec((pl.Squeezed(), Bsd, Np), lambda w: (w, 0, 0)),   # SE expand (folded)
            pl.BlockSpec((pl.Squeezed(), 1, Np), lambda w: (w, 0, 0)),     # SE expand bias
            pl.BlockSpec((L, K, C, C), lambda w: (0, 0, 0, 0)),            # conv weights (resident)
            pl.BlockSpec((L, C, 2), lambda w: (0, 0, 0)),                  # BN scale | shift
        ],
        out_specs=pl.BlockSpec((pl.Squeezed(), C, Np), lambda w: (w, 0, 0)),
    )

    out = pl.pallas_call(
        _make_kernel(win_len, L, K),
        out_shape=jax.ShapeDtypeStruct((slide_windows, C, Np), jnp.float32),
        grid_spec=grid_spec,
        compiler_params=pltpu.CompilerParams(
            dimension_semantics=("parallel",)),
    )(x_wins, w1p, b1c, w2e, b2e, cw, bn)                              # (SW, C, Np)

    # drop lane padding; layout plumbing back to PyTorch's per-window
    # flatten + cat(dim=1) ordering
    out = out[:, :, :N].reshape(slide_windows, C, B, H * win_len)
    out = jnp.transpose(out, (2, 0, 1, 3)).reshape(B, slide_windows * C * H * win_len)
    return out


# ----------------------------------------------------------------------------
# Pure-JAX reference (mirrors the PyTorch module, eval-mode BN / identity drop)
# ----------------------------------------------------------------------------
def reference_forward(x, params, *, slide_windows, slide_step, input_length):
    conv_w = params["conv_w"]
    conv_b = params["conv_b"]
    bn_scale = params["bn_scale"]
    bn_shift = params["bn_shift"]
    B = x.shape[0]
    L, K = conv_w.shape[0], conv_w.shape[1]
    outs = []
    for i in range(slide_windows):
        start = i * slide_step
        end = input_length - (slide_windows - i - 1) * slide_step
        xw = x[:, :, :, start:end]
        Wn = end - start
        w1, b1, w2, b2 = params["se"][i]
        pooled = jnp.mean(xw, axis=(1, 2))                           # (B, Wn)
        sq = jnp.maximum(pooled @ w1.T + b1, 0.0)                    # (B, sd)
        gate = jax.nn.sigmoid(sq @ w2.T + b2)                        # (B, Wn)
        se = xw * gate[:, None, None, :]
        last = se
        for l in range(L):
            d = l + 1
            pad = (K - 1) * d
            padded = jnp.pad(last, ((0, 0), (0, 0), (0, 0), (pad, 0)))
            conv = jnp.zeros_like(se)
            for t in range(K):
                conv = conv + jnp.einsum('oc,bchw->bohw', conv_w[l, t],
                                         padded[:, :, :, t * d:t * d + Wn])
            conv = conv + conv_b[l][None, :, None, None]
            z = conv * bn_scale[l][None, :, None, None] + bn_shift[l][None, :, None, None]
            last = _elu(_elu(z) + se)
        outs.append(last.reshape(B, -1))
    return jnp.concatenate(outs, axis=1)


if __name__ == "__main__":
    # module hyper-parameters
    dilate_layers = 3
    dilate_kernel_size = 2
    slide_windows = 2
    slide_step = 4
    num_channels = 4
    input_length = 16
    squeeze_dim = 4
    H = 8
    B = 2

    key = jax.random.PRNGKey(0)
    kx, kp = jax.random.split(key)
    x = jax.random.normal(kx, (B, num_channels, H, input_length), jnp.float32)
    params = init_params(kp, dilate_layers, dilate_kernel_size, slide_windows,
                         slide_step, num_channels, input_length, squeeze_dim)

    fwd = jax.jit(functools.partial(dilated_conv2d_forward,
                                    slide_windows=slide_windows,
                                    slide_step=slide_step,
                                    input_length=input_length))
    out = jax.block_until_ready(fwd(x, params))

    win_len = input_length - (slide_windows - 1) * slide_step
    expected = (B, slide_windows * num_channels * H * win_len)
    assert out.shape == expected, (out.shape, expected)
    assert bool(jnp.all(jnp.isfinite(out)))

    # pure-JAX reference check (tolerance covers XLA's default matmul precision)
    with jax.default_matmul_precision("highest"):
        ref = reference_forward(x, params, slide_windows=slide_windows,
                                slide_step=slide_step, input_length=input_length)
    max_err = float(jnp.max(jnp.abs(out - ref)))
    assert bool(jnp.allclose(out, ref, rtol=2e-2, atol=2e-2)), max_err

    print("KERNEL_OK")
</pallas_src>

<mosaic_0001>
module attributes {stable_mosaic.version = 11 : i64} {
  func.func @kernel(%arg0: i32, %arg1: memref<1x4x256xf32, #tpu.memory_space<vmem>>, %arg2: memref<1x8x256xf32, #tpu.memory_space<vmem>>, %arg3: memref<1x8x1xf32, #tpu.memory_space<vmem>>, %arg4: memref<1x8x256xf32, #tpu.memory_space<vmem>>, %arg5: memref<1x1x256xf32, #tpu.memory_space<vmem>>, %arg6: memref<3x2x4x4xf32, #tpu.memory_space<vmem>>, %arg7: memref<3x4x2xf32, #tpu.memory_space<vmem>>, %arg8: memref<1x4x256xf32, #tpu.memory_space<vmem>>) attributes {dimension_semantics = [#tpu.dimension_semantics<parallel>], iteration_bounds = array<i64: 2>, scalar_prefetch = 0 : i64, scratch_operands = 0 : i64, tpu.core_type = #tpu.core_type<tc>, window_params = [{transform_indices = @transform_0, window_bounds = array<i64: 1, 4, 256>}, {transform_indices = @transform_1, window_bounds = array<i64: 1, 8, 256>}, {transform_indices = @transform_2, window_bounds = array<i64: 1, 8, 1>}, {transform_indices = @transform_3, window_bounds = array<i64: 1, 8, 256>}, {transform_indices = @transform_4, window_bounds = array<i64: 1, 1, 256>}, {pipeline_mode = #tpu.pipeline_mode<synchronous>, transform_indices = @transform_5, window_bounds = array<i64: 3, 2, 4, 4>}, {pipeline_mode = #tpu.pipeline_mode<synchronous>, transform_indices = @transform_6, window_bounds = array<i64: 3, 4, 2>}, {transform_indices = @transform_7, window_bounds = array<i64: 1, 4, 256>}]} {
    %c0 = arith.constant 0 : index
    %c0_0 = arith.constant 0 : index
    %c0_1 = arith.constant 0 : index
    %0 = vector.load %arg1[%c0, %c0_0, %c0_1] : memref<1x4x256xf32, #tpu.memory_space<vmem>>, vector<1x4x256xf32>
    %1 = vector.shape_cast %0 : vector<1x4x256xf32> to vector<4x256xf32>
    %cst = arith.constant dense<0.000000e+00> : vector<256xf32>
    %2 = vector.multi_reduction <add>, %1, %cst [0] : vector<4x256xf32> to vector<256xf32>
    %3 = vector.shape_cast %2 : vector<256xf32> to vector<1x256xf32>
    %cst_2 = arith.constant 4.000000e+00 : f32
    %4 = vector.broadcast %cst_2 : f32 to vector<1x256xf32>
    %5 = arith.divf %3, %4 : vector<1x256xf32>
    %c0_3 = arith.constant 0 : index
    %c0_4 = arith.constant 0 : index
    %c0_5 = arith.constant 0 : index
    %6 = vector.load %arg2[%c0_3, %c0_4, %c0_5] : memref<1x8x256xf32, #tpu.memory_space<vmem>>, vector<1x8x256xf32>
    %7 = vector.shape_cast %6 : vector<1x8x256xf32> to vector<8x256xf32>
    %8 = vector.broadcast %5 : vector<1x256xf32> to vector<8x256xf32>
    %9 = arith.mulf %7, %8 : vector<8x256xf32>
    %cst_6 = arith.constant dense<0.000000e+00> : vector<8xf32>
    %10 = vector.multi_reduction <add>, %9, %cst_6 [1] : vector<8x256xf32> to vector<8xf32>
    %11 = vector.shape_cast %10 : vector<8xf32> to vector<8x1xf32>
    %c0_7 = arith.constant 0 : index
    %c0_8 = arith.constant 0 : index
    %c0_9 = arith.constant 0 : index
    %12 = vector.load %arg3[%c0_7, %c0_8, %c0_9] : memref<1x8x1xf32, #tpu.memory_space<vmem>>, vector<1x8x1xf32>
    %13 = vector.shape_cast %12 : vector<1x8x1xf32> to vector<8x1xf32>
    %14 = arith.addf %11, %13 : vector<8x1xf32>
    %cst_10 = arith.constant 0.000000e+00 : f32
    %15 = vector.broadcast %cst_10 : f32 to vector<8x1xf32>
    %16 = arith.maximumf %14, %15 : vector<8x1xf32>
    %c0_11 = arith.constant 0 : index
    %c0_12 = arith.constant 0 : index
    %c0_13 = arith.constant 0 : index
    %17 = vector.load %arg4[%c0_11, %c0_12, %c0_13] : memref<1x8x256xf32, #tpu.memory_space<vmem>>, vector<1x8x256xf32>
    %18 = vector.shape_cast %17 : vector<1x8x256xf32> to vector<8x256xf32>
    %19 = vector.broadcast %16 : vector<8x1xf32> to vector<8x256xf32>
    %20 = arith.mulf %18, %19 : vector<8x256xf32>
    %cst_14 = arith.constant dense<0.000000e+00> : vector<256xf32>
    %21 = vector.multi_reduction <add>, %20, %cst_14 [0] : vector<8x256xf32> to vector<256xf32>
    %22 = vector.shape_cast %21 : vector<256xf32> to vector<1x256xf32>
    %c0_15 = arith.constant 0 : index
    %c0_16 = arith.constant 0 : index
    %c0_17 = arith.constant 0 : index
    %23 = vector.load %arg5[%c0_15, %c0_16, %c0_17] : memref<1x1x256xf32, #tpu.memory_space<vmem>>, vector<1x1x256xf32>
    %24 = vector.shape_cast %23 : vector<1x1x256xf32> to vector<1x256xf32>
    %25 = arith.addf %22, %24 : vector<1x256xf32>
    %26 = arith.negf %25 : vector<1x256xf32>
    %27 = math.exp %26 : vector<1x256xf32>
    %cst_18 = arith.constant 1.000000e+00 : f32
    %28 = vector.broadcast %cst_18 : f32 to vector<1x256xf32>
    %29 = arith.addf %28, %27 : vector<1x256xf32>
    %30 = arith.divf %28, %29 : vector<1x256xf32>
    %31 = vector.broadcast %30 : vector<1x256xf32> to vector<4x256xf32>
    %32 = arith.mulf %1, %31 : vector<4x256xf32>
    %33 = tpu.iota {dimensions = array<i32: 1>} : vector<4x256xi32>
    %c12_i32 = arith.constant 12 : i32
    %c0_i32 = arith.constant 0 : i32
    %34 = arith.cmpi eq, %c12_i32, %c0_i32 : i32
    %c1_i32 = arith.constant 1 : i32
    %35 = arith.select %34, %c1_i32, %c12_i32 : i32
    %36 = vector.broadcast %35 : i32 to vector<4x256xi32>
    %37 = arith.remsi %33, %36 : vector<4x256xi32>
    %c0_i32_19 = arith.constant 0 : i32
    %38 = vector.broadcast %c0_i32_19 : i32 to vector<4x256xi32>
    %39 = arith.cmpi ne, %37, %38 : vector<4x256xi32>
    %c0_i32_20 = arith.constant 0 : i32
    %40 = vector.broadcast %c0_i32_20 : i32 to vector<4x256xi32>
    %41 = arith.cmpi slt, %37, %40 : vector<4x256xi32>
    %c0_i32_21 = arith.constant 0 : i32
    %42 = arith.cmpi slt, %35, %c0_i32_21 : i32
    %43 = vector.broadcast %42 : i1 to vector<4x256xi1>
    %44 = vector.broadcast %43 : vector<4x256xi1> to vector<4x256xi1>
    %45 = arith.xori %41, %44 : vector<4x256xi1>
    %46 = arith.andi %45, %39 : vector<4x256xi1>
    %47 = vector.broadcast %35 : i32 to vector<4x256xi32>
    %48 = arith.addi %37, %47 : vector<4x256xi32>
    %49 = arith.select %46, %48, %37 : vector<4x256xi1>, vector<4x256xi32>
    %c1_i32_22 = arith.constant 1 : i32
    %50 = vector.broadcast %c1_i32_22 : i32 to vector<4x256xi32>
    %51 = arith.cmpi sge, %49, %50 : vector<4x256xi32>
    %c1_i32_23 = arith.constant 1 : i32
    %52 = tpu.dynamic_rotate %32 by %c1_i32_23 dim 1 : vector<4x256xf32>, i32 -> vector<4x256xf32>
    %cst_24 = arith.constant 0.000000e+00 : f32
    %53 = vector.broadcast %cst_24 : f32 to vector<4x256xf32>
    %54 = arith.select %51, %52, %53 : vector<4x256xi1>, vector<4x256xf32>
    %c0_25 = arith.constant 0 : index
    %c0_26 = arith.constant 0 : index
    %c0_27 = arith.constant 0 : index
    %c0_28 = arith.constant 0 : index
    %55 = vector.load %arg6[%c0_25, %c0_26, %c0_27, %c0_28] : memref<3x2x4x4xf32, #tpu.memory_space<vmem>>, vector<1x1x4x4xf32>
    %56 = vector.shape_cast %55 : vector<1x1x4x4xf32> to vector<4x4xf32>
    %cst_29 = arith.constant dense<0.000000e+00> : vector<4x256xf32>
    %57 = tpu.matmul %56, %54, %cst_29 {dimension_numbers = #tpu.dot_dimension_numbers<[1], [0], [0], [1], [0, 0, 1, 1], [], []>} : vector<4x4xf32>, vector<4x256xf32>, vector<4x256xf32> -> vector<4x256xf32>
    %c0_30 = arith.constant 0 : index
    %c1 = arith.constant 1 : index
    %c0_31 = arith.constant 0 : index
    %c0_32 = arith.constant 0 : index
    %58 = vector.load %arg6[%c0_30, %c1, %c0_31, %c0_32] : memref<3x2x4x4xf32, #tpu.memory_space<vmem>>, vector<1x1x4x4xf32>
    %59 = vector.shape_cast %58 : vector<1x1x4x4xf32> to vector<4x4xf32>
    %cst_33 = arith.constant dense<0.000000e+00> : vector<4x256xf32>
    %60 = tpu.matmul %59, %32, %cst_33 {dimension_numbers = #tpu.dot_dimension_numbers<[1], [0], [0], [1], [0, 0, 1, 1], [], []>} : vector<4x4xf32>, vector<4x256xf32>, vector<4x256xf32> -> vector<4x256xf32>
    %61 = arith.addf %57, %60 : vector<4x256xf32>
    %c0_34 = arith.constant 0 : index
    %c0_35 = arith.constant 0 : index
    %c0_36 = arith.constant 0 : index
    %62 = vector.load %arg7[%c0_34, %c0_35, %c0_36] : memref<3x4x2xf32, #tpu.memory_space<vmem>>, vector<1x4x2xf32>
    %63 = vector.shape_cast %62 : vector<1x4x2xf32> to vector<4x2xf32>
    %64 = vector.extract_strided_slice %63 {offsets = [0, 0], sizes = [4, 1], strides = [1, 1]} : vector<4x2xf32> to vector<4x1xf32>
    %65 = vector.broadcast %64 : vector<4x1xf32> to vector<4x256xf32>
    %66 = arith.mulf %61, %65 : vector<4x256xf32>
    %67 = vector.extract_strided_slice %63 {offsets = [0, 1], sizes = [4, 1], strides = [1, 1]} : vector<4x2xf32> to vector<4x1xf32>
    %68 = vector.broadcast %67 : vector<4x1xf32> to vector<4x256xf32>
    %69 = arith.addf %66, %68 : vector<4x256xf32>
    %cst_37 = arith.constant 0.000000e+00 : f32
    %70 = vector.broadcast %cst_37 : f32 to vector<4x256xf32>
    %71 = arith.cmpf ogt, %69, %70 : vector<4x256xf32>
    %cst_38 = arith.constant 0.000000e+00 : f32
    %72 = vector.broadcast %cst_38 : f32 to vector<4x256xf32>
    %73 = arith.minimumf %69, %72 : vector<4x256xf32>
    %74 = math.exp %73 : vector<4x256xf32>
    %cst_39 = arith.constant 1.000000e+00 : f32
    %75 = vector.broadcast %cst_39 : f32 to vector<4x256xf32>
    %76 = arith.subf %74, %75 : vector<4x256xf32>
    %77 = arith.select %71, %69, %76 : vector<4x256xi1>, vector<4x256xf32>
    %78 = arith.addf %77, %32 : vector<4x256xf32>
    %cst_40 = arith.constant 0.000000e+00 : f32
    %79 = vector.broadcast %cst_40 : f32 to vector<4x256xf32>
    %80 = arith.cmpf ogt, %78, %79 : vector<4x256xf32>
    %cst_41 = arith.constant 0.000000e+00 : f32
    %81 = vector.broadcast %cst_41 : f32 to vector<4x256xf32>
    %82 = arith.minimumf %78, %81 : vector<4x256xf32>
    %83 = math.exp %82 : vector<4x256xf32>
    %cst_42 = arith.constant 1.000000e+00 : f32
    %84 = vector.broadcast %cst_42 : f32 to vector<4x256xf32>
    %85 = arith.subf %83, %84 : vector<4x256xf32>
    %86 = arith.select %80, %78, %85 : vector<4x256xi1>, vector<4x256xf32>
    %c2_i32 = arith.constant 2 : i32
    %87 = vector.broadcast %c2_i32 : i32 to vector<4x256xi32>
    %88 = arith.cmpi sge, %49, %87 : vector<4x256xi32>
    %c2_i32_43 = arith.constant 2 : i32
    %89 = tpu.dynamic_rotate %86 by %c2_i32_43 dim 1 : vector<4x256xf32>, i32 -> vector<4x256xf32>
    %cst_44 = arith.constant 0.000000e+00 : f32
    %90 = vector.broadcast %cst_44 : f32 to vector<4x256xf32>
    %91 = arith.select %88, %89, %90 : vector<4x256xi1>, vector<4x256xf32>
    %c1_45 = arith.constant 1 : index
    %c0_46 = arith.constant 0 : index
    %c0_47 = arith.constant 0 : index
    %c0_48 = arith.constant 0 : index
    %92 = vector.load %arg6[%c1_45, %c0_46, %c0_47, %c0_48] : memref<3x2x4x4xf32, #tpu.memory_space<vmem>>, vector<1x1x4x4xf32>
    %93 = vector.shape_cast %92 : vector<1x1x4x4xf32> to vector<4x4xf32>
    %cst_49 = arith.constant dense<0.000000e+00> : vector<4x256xf32>
    %94 = tpu.matmul %93, %91, %cst_49 {dimension_numbers = #tpu.dot_dimension_numbers<[1], [0], [0], [1], [0, 0, 1, 1], [], []>} : vector<4x4xf32>, vector<4x256xf32>, vector<4x256xf32> -> vector<4x256xf32>
    %c1_50 = arith.constant 1 : index
    %c1_51 = arith.constant 1 : index
    %c0_52 = arith.constant 0 : index
    %c0_53 = arith.constant 0 : index
    %95 = vector.load %arg6[%c1_50, %c1_51, %c0_52, %c0_53] : memref<3x2x4x4xf32, #tpu.memory_space<vmem>>, vector<1x1x4x4xf32>
    %96 = vector.shape_cast %95 : vector<1x1x4x4xf32> to vector<4x4xf32>
    %cst_54 = arith.constant dense<0.000000e+00> : vector<4x256xf32>
    %97 = tpu.matmul %96, %86, %cst_54 {dimension_numbers = #tpu.dot_dimension_numbers<[1], [0], [0], [1], [0, 0, 1, 1], [], []>} : vector<4x4xf32>, vector<4x256xf32>, vector<4x256xf32> -> vector<4x256xf32>
    %98 = arith.addf %94, %97 : vector<4x256xf32>
    %c1_55 = arith.constant 1 : index
    %c0_56 = arith.constant 0 : index
    %c0_57 = arith.constant 0 : index
    %99 = vector.load %arg7[%c1_55, %c0_56, %c0_57] : memref<3x4x2xf32, #tpu.memory_space<vmem>>, vector<1x4x2xf32>
    %100 = vector.shape_cast %99 : vector<1x4x2xf32> to vector<4x2xf32>
    %101 = vector.extract_strided_slice %100 {offsets = [0, 0], sizes = [4, 1], strides = [1, 1]} : vector<4x2xf32> to vector<4x1xf32>
    %102 = vector.broadcast %101 : vector<4x1xf32> to vector<4x256xf32>
    %103 = arith.mulf %98, %102 : vector<4x256xf32>
    %104 = vector.extract_strided_slice %100 {offsets = [0, 1], sizes = [4, 1], strides = [1, 1]} : vector<4x2xf32> to vector<4x1xf32>
    %105 = vector.broadcast %104 : vector<4x1xf32> to vector<4x256xf32>
    %106 = arith.addf %103, %105 : vector<4x256xf32>
    %cst_58 = arith.constant 0.000000e+00 : f32
    %107 = vector.broadcast %cst_58 : f32 to vector<4x256xf32>
    %108 = arith.cmpf ogt, %106, %107 : vector<4x256xf32>
    %cst_59 = arith.constant 0.000000e+00 : f32
    %109 = vector.broadcast %cst_59 : f32 to vector<4x256xf32>
    %110 = arith.minimumf %106, %109 : vector<4x256xf32>
    %111 = math.exp %110 : vector<4x256xf32>
    %cst_60 = arith.constant 1.000000e+00 : f32
    %112 = vector.broadcast %cst_60 : f32 to vector<4x256xf32>
    %113 = arith.subf %111, %112 : vector<4x256xf32>
    %114 = arith.select %108, %106, %113 : vector<4x256xi1>, vector<4x256xf32>
    %115 = arith.addf %114, %32 : vector<4x256xf32>
    %cst_61 = arith.constant 0.000000e+00 : f32
    %116 = vector.broadcast %cst_61 : f32 to vector<4x256xf32>
    %117 = arith.cmpf ogt, %115, %116 : vector<4x256xf32>
    %cst_62 = arith.constant 0.000000e+00 : f32
    %118 = vector.broadcast %cst_62 : f32 to vector<4x256xf32>
    %119 = arith.minimumf %115, %118 : vector<4x256xf32>
    %120 = math.exp %119 : vector<4x256xf32>
    %cst_63 = arith.constant 1.000000e+00 : f32
    %121 = vector.broadcast %cst_63 : f32 to vector<4x256xf32>
    %122 = arith.subf %120, %121 : vector<4x256xf32>
    %123 = arith.select %117, %115, %122 : vector<4x256xi1>, vector<4x256xf32>
    %c3_i32 = arith.constant 3 : i32
    %124 = vector.broadcast %c3_i32 : i32 to vector<4x256xi32>
    %125 = arith.cmpi sge, %49, %124 : vector<4x256xi32>
    %c3_i32_64 = arith.constant 3 : i32
    %126 = tpu.dynamic_rotate %123 by %c3_i32_64 dim 1 : vector<4x256xf32>, i32 -> vector<4x256xf32>
    %cst_65 = arith.constant 0.000000e+00 : f32
    %127 = vector.broadcast %cst_65 : f32 to vector<4x256xf32>
    %128 = arith.select %125, %126, %127 : vector<4x256xi1>, vector<4x256xf32>
    %c2 = arith.constant 2 : index
    %c0_66 = arith.constant 0 : index
    %c0_67 = arith.constant 0 : index
    %c0_68 = arith.constant 0 : index
    %129 = vector.load %arg6[%c2, %c0_66, %c0_67, %c0_68] : memref<3x2x4x4xf32, #tpu.memory_space<vmem>>, vector<1x1x4x4xf32>
    %130 = vector.shape_cast %129 : vector<1x1x4x4xf32> to vector<4x4xf32>
    %cst_69 = arith.constant dense<0.000000e+00> : vector<4x256xf32>
    %131 = tpu.matmul %130, %128, %cst_69 {dimension_numbers = #tpu.dot_dimension_numbers<[1], [0], [0], [1], [0, 0, 1, 1], [], []>} : vector<4x4xf32>, vector<4x256xf32>, vector<4x256xf32> -> vector<4x256xf32>
    %c2_70 = arith.constant 2 : index
    %c1_71 = arith.constant 1 : index
    %c0_72 = arith.constant 0 : index
    %c0_73 = arith.constant 0 : index
    %132 = vector.load %arg6[%c2_70, %c1_71, %c0_72, %c0_73] : memref<3x2x4x4xf32, #tpu.memory_space<vmem>>, vector<1x1x4x4xf32>
    %133 = vector.shape_cast %132 : vector<1x1x4x4xf32> to vector<4x4xf32>
    %cst_74 = arith.constant dense<0.000000e+00> : vector<4x256xf32>
    %134 = tpu.matmul %133, %123, %cst_74 {dimension_numbers = #tpu.dot_dimension_numbers<[1], [0], [0], [1], [0, 0, 1, 1], [], []>} : vector<4x4xf32>, vector<4x256xf32>, vector<4x256xf32> -> vector<4x256xf32>
    %135 = arith.addf %131, %134 : vector<4x256xf32>
    %c2_75 = arith.constant 2 : index
    %c0_76 = arith.constant 0 : index
    %c0_77 = arith.constant 0 : index
    %136 = vector.load %arg7[%c2_75, %c0_76, %c0_77] : memref<3x4x2xf32, #tpu.memory_space<vmem>>, vector<1x4x2xf32>
    %137 = vector.shape_cast %136 : vector<1x4x2xf32> to vector<4x2xf32>
    %138 = vector.extract_strided_slice %137 {offsets = [0, 0], sizes = [4, 1], strides = [1, 1]} : vector<4x2xf32> to vector<4x1xf32>
    %139 = vector.broadcast %138 : vector<4x1xf32> to vector<4x256xf32>
    %140 = arith.mulf %135, %139 : vector<4x256xf32>
    %141 = vector.extract_strided_slice %137 {offsets = [0, 1], sizes = [4, 1], strides = [1, 1]} : vector<4x2xf32> to vector<4x1xf32>
    %142 = vector.broadcast %141 : vector<4x1xf32> to vector<4x256xf32>
    %143 = arith.addf %140, %142 : vector<4x256xf32>
    %cst_78 = arith.constant 0.000000e+00 : f32
    %144 = vector.broadcast %cst_78 : f32 to vector<4x256xf32>
    %145 = arith.cmpf ogt, %143, %144 : vector<4x256xf32>
    %cst_79 = arith.constant 0.000000e+00 : f32
    %146 = vector.broadcast %cst_79 : f32 to vector<4x256xf32>
    %147 = arith.minimumf %143, %146 : vector<4x256xf32>
    %148 = math.exp %147 : vector<4x256xf32>
    %cst_80 = arith.constant 1.000000e+00 : f32
    %149 = vector.broadcast %cst_80 : f32 to vector<4x256xf32>
    %150 = arith.subf %148, %149 : vector<4x256xf32>
    %151 = arith.select %145, %143, %150 : vector<4x256xi1>, vector<4x256xf32>
    %152 = arith.addf %151, %32 : vector<4x256xf32>
    %cst_81 = arith.constant 0.000000e+00 : f32
    %153 = vector.broadcast %cst_81 : f32 to vector<4x256xf32>
    %154 = arith.cmpf ogt, %152, %153 : vector<4x256xf32>
    %cst_82 = arith.constant 0.000000e+00 : f32
    %155 = vector.broadcast %cst_82 : f32 to vector<4x256xf32>
    %156 = arith.minimumf %152, %155 : vector<4x256xf32>
    %157 = math.exp %156 : vector<4x256xf32>
    %cst_83 = arith.constant 1.000000e+00 : f32
    %158 = vector.broadcast %cst_83 : f32 to vector<4x256xf32>
    %159 = arith.subf %157, %158 : vector<4x256xf32>
    %160 = arith.select %154, %152, %159 : vector<4x256xi1>, vector<4x256xf32>
    %c0_84 = arith.constant 0 : index
    %c0_85 = arith.constant 0 : index
    %c0_86 = arith.constant 0 : index
    %161 = vector.load %arg8[%c0_84, %c0_85, %c0_86] : memref<1x4x256xf32, #tpu.memory_space<vmem>>, vector<1x4x256xf32>
    %162 = vector.shape_cast %161 : vector<1x4x256xf32> to vector<4x256xf32>
    %163 = vector.shape_cast %160 : vector<4x256xf32> to vector<1x4x256xf32>
    tpu.vector_store %arg8[%c0_84, %c0_85, %c0_86], %163 {strides = array<i32>} : memref<1x4x256xf32, #tpu.memory_space<vmem>>, vector<1x4x256xf32>,
    return
  }
  func.func @transform_0(%arg0: i32) -> (i32, i32, i32) {
    %c0_i32 = arith.constant 0 : i32
    %c0_i32_0 = arith.constant 0 : i32
    %c0_i32_1 = arith.constant 0 : i32
    return %arg0, %c0_i32, %c0_i32_0 : i32, i32, i32
  }
  func.func @transform_1(%arg0: i32) -> (i32, i32, i32) {
    %c0_i32 = arith.constant 0 : i32
    %c0_i32_0 = arith.constant 0 : i32
    %c0_i32_1 = arith.constant 0 : i32
    return %arg0, %c0_i32, %c0_i32_0 : i32, i32, i32
  }
  func.func @transform_2(%arg0: i32) -> (i32, i32, i32) {
    %c0_i32 = arith.constant 0 : i32
    %c0_i32_0 = arith.constant 0 : i32
    %c0_i32_1 = arith.constant 0 : i32
    return %arg0, %c0_i32, %c0_i32_0 : i32, i32, i32
  }
  func.func @transform_3(%arg0: i32) -> (i32, i32, i32) {
    %c0_i32 = arith.constant 0 : i32
    %c0_i32_0 = arith.constant 0 : i32
    %c0_i32_1 = arith.constant 0 : i32
    return %arg0, %c0_i32, %c0_i32_0 : i32, i32, i32
  }
  func.func @transform_4(%arg0: i32) -> (i32, i32, i32) {
    %c0_i32 = arith.constant 0 : i32
    %c0_i32_0 = arith.constant 0 : i32
    %c0_i32_1 = arith.constant 0 : i32
    return %arg0, %c0_i32, %c0_i32_0 : i32, i32, i32
  }
  func.func @transform_5(%arg0: i32) -> (i32, i32, i32, i32) {
    %c0_i32 = arith.constant 0 : i32
    %c0_i32_0 = arith.constant 0 : i32
    %c0_i32_1 = arith.constant 0 : i32
    %c0_i32_2 = arith.constant 0 : i32
    %c0_i32_3 = arith.constant 0 : i32
    return %c0_i32, %c0_i32_0, %c0_i32_1, %c0_i32_2 : i32, i32, i32, i32
  }
  func.func @transform_6(%arg0: i32) -> (i32, i32, i32) {
    %c0_i32 = arith.constant 0 : i32
    %c0_i32_0 = arith.constant 0 : i32
    %c0_i32_1 = arith.constant 0 : i32
    %c0_i32_2 = arith.constant 0 : i32
    return %c0_i32, %c0_i32_0, %c0_i32_1 : i32, i32, i32
  }
  func.func @transform_7(%arg0: i32) -> (i32, i32, i32) {
    %c0_i32 = arith.constant 0 : i32
    %c0_i32_0 = arith.constant 0 : i32
    %c0_i32_1 = arith.constant 0 : i32
    return %arg0, %c0_i32, %c0_i32_0 : i32, i32, i32
  }
}

</mosaic_0001>

<bundles_post_ra>
// kernel: tile.31
= control target key start
LH: loop header
LB: loop body
LE: loop exit
PB: predicated region body
PF: predicated region fallthrough
CT: control target
= control target key end

     0   :  { %s22_s0 = inlined_call_operand.vmem [shape: f32[4], index: 0, kind: input, shape index: {}]   ;;  %s23_s1 = inlined_call_operand.vmem [shape: f32[2,4], index: 1, kind: output, shape index: {}]  }
   0x1   :  { %v4_v0 = vld [vmem:[%s22_s0] ss:$0 sm:$0xff] }
   0x2   :  { %5 = vst [vmem:[%s23_s1] sm:$0x3] %v4_v0 }

// kernel: tile.1
= control target key start
LH: loop header
LB: loop body
LE: loop exit
PB: predicated region body
PF: predicated region fallthrough
CT: control target
= control target key end

     0   :  { %s35_s8 = smov 125   ;;  %vm8_vm0 = vcmask 7168   ;;  %s36_s11 = smov 126   ;;  %s62_s0 = inlined_call_operand.vmem [shape: f32[2,4], index: 0, kind: input, shape index: {}]   ;;  %s63_s1 = inlined_call_operand.vmem [shape: f32[1,8,1], index: 1, kind: output, shape index: {}]  }
   0x1   :  { %v5_v0 = vld [vmem:[%s62_s0] sm:$0x3]  ;;  %s34_s0 = smov 127  }
   0x2   :  { %6 = vst [vmem:[#allocation0] sm:$0x3] %v5_v0 }
   0x9   :  { %v10_v1 = vld [vmem:[#allocation0] sm:$0x3]  }
   0xa   :  { %v22_v2 = vld [vmem:[#allocation0] sm:$0x3]   ;;  %11 = vrot.lane.b32.xlu0 %v10_v1, %s34_s0 }
   0xb   :  { %23 = vrot.lane.b32.xlu1 %v22_v2, %s35_s8  ;;  %v7_v3 = vld [vmem:[#allocation0] sm:$0x3]  }
   0xc   :  { %v16_v4 = vld [vmem:[#allocation0] sm:$0x3]   ;;  %9 = vst.msk [vmem:[%s63_s1] ss:$4 sm:$0x3] %vm8_vm0, %v7_v3  }
   0xe   :  { %17 = vrot.lane.b32.xlu0 %v16_v4, %s36_s11 }
  0x7c   :  { %v12_v5 = vpop.permute.xlu0 %11  }
  0x7d   :  { %v24_v6 = vpop.permute.xlu1 %23   ;;  %28 = vst.msk [vmem:[%s63_s1 + $0x1] ss:$4 sm:$0x3] %vm8_vm0, %v12_v5  }
  0x7e   :  { %30 = vst.msk [vmem:[%s63_s1 + $0x3] ss:$4 sm:$0x3] %vm8_vm0, %v24_v6  }
  0x80   :  { %v18_v7 = vpop.permute.xlu0 %17  }
  0x81   :  { %29 = vst.msk [vmem:[%s63_s1 + $0x2] ss:$4 sm:$0x3] %vm8_vm0, %v18_v7  }

// kernel: tile.35
= control target key start
LH: loop header
LB: loop body
LE: loop exit
PB: predicated region body
PF: predicated region fallthrough
CT: control target
= control target key end

     0   :  { %s28_s0 = inlined_call_operand.vmem [shape: f32[12], index: 0, kind: input, shape index: {}]   ;;  %s29_s1 = inlined_call_operand.vmem [shape: f32[16,12], index: 1, kind: output, shape index: {}]  }
   0x1   :  { %v4_v0 = vld [vmem:[%s28_s0] ss:$0 sm:$0xff] }
   0x2   :  { %5 = vst [vmem:[%s29_s1] sm:$0xff] %v4_v0  ;;  %8 = vst [vmem:[%s29_s1 + $0x8] sm:$0xff] %v4_v0 }

// kernel: tile.39
= control target key start
LH: loop header
LB: loop body
LE: loop exit
PB: predicated region body
PF: predicated region fallthrough
CT: control target
= control target key end

     0   :  { %vm9_vm0 = vcmask 64512   ;;  %s153_s12 = smov 120   ;;  %s154_s13 = smov 96   ;;  %vm3_vm1 = vcmask 97280   ;;  %vm13_vm2 = vcmask 31744   ;;  %vm16_vm3 = vcmask 1048512   ;;  %s235_s0 = inlined_call_operand.vmem [shape: f32[16,12], index: 0, kind: input, shape index: {}]   ;;  %s236_s1 = inlined_call_operand.vmem [shape: f32[1,1,192], index: 1, kind: output, shape index: {}]  }
   0x1   :  { %v121_v0 = vld [vmem:[%s235_s0 + $0xa] sm:$0x1]   ;;  %v124_v3 = vld [vmem:[%s235_s0 + $0x8] sm:$0x1]   ;;  %v123_v4 = vld [vmem:[%s235_s0 + $0x9] sm:$0x1]  }
   0x2   :  { %v122_v1 = vld [vmem:[%s235_s0 + $0xa] sm:$0x1]   ;;  %26 = vrot.lane.b32.xlu1 %v124_v3, %s154_s13  ;;  %v125_v5 = vld [vmem:[%s235_s0 + $0x7] sm:$0x1]   ;;  %s155_s18 = smov 108   ;;  %s156_s19 = smov 84  }
   0x3   :  { %v10_v2 = vsel %vm9_vm0, %v122_v1, %v121_v0  ;;  %v126_v6 = vld [vmem:[%s235_s0 + $0x6] sm:$0x1]   ;;  %v127_v7 = vld [vmem:[%s235_s0 + $0x5] sm:$0x1]   ;;  %v2_v8 = vld [vmem:[%s235_s0] sm:$0x1]  }
   0x4   :  { %11 = vrot.lane.b32.xlu0 %v10_v2, %s153_s12  ;;  %4 = vst.msk [vmem:[#allocation0] sm:$0x1] %vm3_vm1, %v2_v8   ;;  %s157_s26 = smov 72   ;;  %s158_s27 = smov 60   ;;  %v128_v9 = vld [vmem:[%s235_s0 + $0xf] sm:$0x1]  }
   0x5   :  { %v129_v10 = vld [vmem:[%s235_s0 + $0x4] sm:$0x1]   ;;  %s159_s3 = smov 52   ;;  %s160_s4 = smov 48   ;;  %v130_v11 = vld [vmem:[%s235_s0 + $0xe] sm:$0x1]  }
   0x6   :  { %32 = vrot.lane.b32.xlu1 %v125_v5, %s156_s19  ;;  %v131_v12 = vld [vmem:[%s235_s0 + $0x3] sm:$0x1]   ;;  %s161_s9 = smov 40   ;;  %s162_s10 = smov 36   ;;  %v132_v13 = vld [vmem:[%s235_s0 + $0xd] sm:$0x1]  }
   0x7   :  { %v133_v14 = vld [vmem:[%s235_s0 + $0x2] sm:$0x1]   ;;  %s163_s15 = smov 28   ;;  %s164_s16 = smov 24   ;;  %v134_v15 = vld [vmem:[%s235_s0 + $0xc] sm:$0x1]  }
   0x8   :  { %20 = vrot.lane.b32.xlu0 %v123_v4, %s155_s18  ;;  %v135_v16 = vld [vmem:[%s235_s0 + $0x1] sm:$0x1]   ;;  %s165_s21 = smov 16   ;;  %s166_s22 = smov 12   ;;  %v136_v17 = vld [vmem:[%s235_s0 + $0xb] sm:$0x1]  }
   0x9   :  { %s167_s0 = smov 4   ;;  %vm22_vm4 = vcmask 982880   ;;  %vm28_vm5 = vcmask 884480   ;;  %vm34_vm6 = vcmask 786080   ;;  %vm40_vm7 = vcmask 687680  }
   0xa   :  { %44 = vrot.lane.b32.xlu1 %v127_v7, %s158_s27  ;;  %vm46_vm8 = vcmask 589280   ;;  %vm52_vm9 = vcmask 523680   ;;  %vm59_vm10 = vcmask 490880   ;;  %vm65_vm11 = vcmask 425280  }
   0xb   :  { %vm72_vm12 = vcmask 392480   ;;  %vm78_vm13 = vcmask 326880   ;;  %vm85_vm14 = vcmask 294080   ;;  %vm91_vm15 = vcmask 228480  }
   0xc   :  { %38 = vrot.lane.b32.xlu0 %v126_v6, %s157_s26  ;;  %vm98_vm0 = vcmask 195680   ;;  %vm104_vm1 = vcmask 130080  }
   0xe   :  { %57 = vrot.lane.b32.xlu1 %v129_v10, %s160_s4 }
  0x10   :  { %50 = vrot.lane.b32.xlu0 %v128_v9, %s159_s3 }
  0x12   :  { %70 = vrot.lane.b32.xlu1 %v131_v12, %s162_s10 }
  0x14   :  { %63 = vrot.lane.b32.xlu0 %v130_v11, %s161_s9 }
  0x16   :  { %83 = vrot.lane.b32.xlu1 %v133_v14, %s164_s16 }
  0x18   :  { %76 = vrot.lane.b32.xlu0 %v132_v13, %s163_s15 }
  0x1a   :  { %96 = vrot.lane.b32.xlu1 %v135_v16, %s166_s22 }
  0x1c   :  { %89 = vrot.lane.b32.xlu0 %v134_v15, %s165_s21 }
  0x20   :  { %102 = vrot.lane.b32.xlu0 %v136_v17, %s167_s0 }
  0x74   :  { %v27_v19 = vpop.permute.xlu1 %26  }
  0x76   :  { %v12_v18 = vpop.permute.xlu0 %11  }
  0x77   :  { %15 = vst.msk [vmem:[#allocation0 + $0x8] sm:$0x1] %vm13_vm2, %v12_v18  }
  0x78   :  { %17 = vst.msk [vmem:[#allocation0] sm:$0x1] %vm16_vm3, %v12_v18   ;;  %v33_v21 = vpop.permute.xlu1 %32  }
  0x7a   :  { %v21_v20 = vpop.permute.xlu0 %20  }
  0x7b   :  { %23 = vst.msk [vmem:[#allocation0] sm:$0x1] %vm22_vm4, %v21_v20  }
  0x7c   :  { %29 = vst.msk [vmem:[#allocation0] sm:$0x1] %vm28_vm5, %v27_v19   ;;  %v45_v23 = vpop.permute.xlu1 %44  }
  0x7d   :  { %35 = vst.msk [vmem:[#allocation0] sm:$0x1] %vm34_vm6, %v33_v21  }
  0x7e   :  { %v39_v22 = vpop.permute.xlu0 %38  }
  0x7f   :  { %41 = vst.msk [vmem:[#allocation0] sm:$0x1] %vm40_vm7, %v39_v22  }
  0x80   :  { %47 = vst.msk [vmem:[#allocation0] sm:$0x1] %vm46_vm8, %v45_v23   ;;  %v58_v25 = vpop.permute.xlu1 %57  }
  0x81   :  { %60 = vst.msk [vmem:[#allocation0] sm:$0x1] %vm59_vm10, %v58_v25  }
  0x82   :  { %v51_v24 = vpop.permute.xlu0 %50  }
  0x83   :  { %54 = vst.msk [vmem:[#allocation0 + $0x8] sm:$0x1] %vm52_vm9, %v51_v24  }
  0x84   :  { %v71_v27 = vpop.permute.xlu1 %70  }
  0x85   :  { %73 = vst.msk [vmem:[#allocation0] sm:$0x1] %vm72_vm12, %v71_v27  }
  0x86   :  { %v64_v26 = vpop.permute.xlu0 %63  }
  0x87   :  { %67 = vst.msk [vmem:[#allocation0 + $0x8] sm:$0x1] %vm65_vm11, %v64_v26  }
  0x88   :  { %v84_v29 = vpop.permute.xlu1 %83  }
  0x89   :  { %86 = vst.msk [vmem:[#allocation0] sm:$0x1] %vm85_vm14, %v84_v29  }
  0x8a   :  { %v77_v28 = vpop.permute.xlu0 %76  }
  0x8b   :  { %80 = vst.msk [vmem:[#allocation0 + $0x8] sm:$0x1] %vm78_vm13, %v77_v28  }
  0x8c   :  { %v97_v31 = vpop.permute.xlu1 %96  }
  0x8d   :  { %99 = vst.msk [vmem:[#allocation0] sm:$0x1] %vm98_vm0, %v97_v31  }
  0x8e   :  { %v90_v30 = vpop.permute.xlu0 %89  }
  0x8f   :  { %93 = vst.msk [vmem:[#allocation0 + $0x8] sm:$0x1] %vm91_vm15, %v90_v30  }
  0x92   :  { %v103_v32 = vpop.permute.xlu0 %102  }
  0x93   :  { %106 = vst.msk [vmem:[#allocation0 + $0x8] sm:$0x1] %vm104_vm1, %v103_v32  }
  0x94   :  { %v111_v33 = vld [vmem:[#allocation0] sm:$0x1] }
  0x95   :  { %114 = vst [vmem:[%s236_s1] sm:$0x1] %v111_v33 }
  0x9a   :  { %v116_v34 = vld [vmem:[#allocation0 + $0x8] sm:$0x1] }
  0x9b   :  { %137 = vst [vmem:[%s236_s1 + $0x1] sm:$0x1] %v116_v34 }

// kernel: dilated_conv2d_forward.1
= control target key start
LH: loop header
LB: loop body
LE: loop exit
PB: predicated region body
PF: predicated region fallthrough
CT: control target
= control target key end

     0   :  { %s1409_s24 = smov 0   ;;  %s1557_s0 = inlined_call_operand.vmem [shape: f32[2,4,256], index: 0, kind: input, shape index: {}]   ;;  %s1558_s1 = inlined_call_operand.vmem [shape: f32[2,8,256], index: 1, kind: input, shape index: {}]   ;;  %s1559_s2 = inlined_call_operand.vmem [shape: f32[2,8,1], index: 2, kind: input, shape index: {}]   ;;  %s1560_s3 = inlined_call_operand.vmem [shape: f32[2,8,256], index: 3, kind: input, shape index: {}]   ;;  %s1561_s4 = inlined_call_operand.vmem [shape: f32[2,1,256], index: 4, kind: input, shape index: {}]   ;;  %s1562_s5 = inlined_call_operand.vmem [shape: f32[3,2,4,4], index: 5, kind: input, shape index: {}]   ;;  %s1563_s6 = inlined_call_operand.vmem [shape: f32[3,4,2], index: 6, kind: input, shape index: {}]   ;;  %s1564_s7 = inlined_call_operand.vmem [shape: f32[2,4,256], index: 7, kind: output, shape index: {}]  }
   0x1 LB: > { %s1236_s25 = sadd.s32 4294967295, %s1361_s24   ;;  %p1240_p0 = scmp.ge.s32.totalorder %s1361_s24, 1  ;;  %s1361_s24 = sphi %s1409_s24, %s17_s24  }
   0x2   : > { %p275_p1 = scmp.lt.s32.totalorder %s1361_s24, 3 }
   0x4   : > { %p276_p2 = pnand %p1240_p0, %p275_p1 }
   0x5   : > { %p325_p3 = scmp.lt.s32.totalorder (!%p276_p2), %s1236_s25, 1  ;;  %s1366_s21 = smov (!%p276_p2), 1  }
   0x6   : > { %279 = sbr.rel (%p276_p2) target bundleno = 1460 (0x5b4), region = 48  ;;  %s1368_s14 = smov (!%p276_p2), 3  }
   0xb   : > { %s1566_s25 = smov (!%p325_p3, %s1236_s25), 1  ;;  %vm357_vm0 = vcmask 1043456   ;;  %v1363_v23 = vmov 0   ;;  %v408_v30 = vlaneseq  ;;  %v1364_v61 = vmov 0.0  }
   0xc   : > { %s1420_s26 = sshll.u32 %s1566_s25, 3  ;;  %s1293_s30 = sshll.u32 %s1566_s25, 4  ;;  %1314 = vset.pattern.permute.xlu0 %v1363_v23  ;;  %1315 = vset.pattern.permute.xlu1 %v1363_v23  ;;  %vm497_vm1 = vcmask 31744  }
   0xd   : > { %s329_s29 = scalar_lea.vmem %s1557_s0, %s1420_s26  ;;  %s334_s10 = scalar_lea.vmem %s1558_s1, %s1293_s30  ;;  %v409_v34 = vshrl.u32 %v408_v30, 7  ;;  %569 = vmatprep.mubr.f32.mxu0 %v1364_v61  ;;  %649 = vmatprep.mubr.f32.mxu1 %v1364_v61 }
   0xe   : > { %v1426_v0 = vld [vmem:[%s329_s29] sm:$0xff]  ;;  %v376_v18 = vld [vmem:[%s334_s10 + $0x8] sm:$0xff]  ;;  %s338_s13 = scalar_lea.vmem %s1559_s2, %s1420_s26  ;;  %s343_s16 = scalar_lea.vmem %s1560_s3, %s1293_s30 }
   0xf   : > { %v355_v1 = vcombine.high %v1426_v0, %v1426_v0  ;;  %v358_v2 = vsel %vm357_vm0, %v1426_v0, 0.0  ;;  %v375_v15 = vld [vmem:[%s334_s10] sm:$0xff]  ;;  %v386_v29 = vld [vmem:[%s343_s16 + $0x8] sm:$0xff]  ;;  %s1248_s17 = sshll.u32 %s1566_s25, 1  ;;  %v410_v39 = vsub.s32 0, %v409_v34  ;;  %v414_v40 = vsub.s32 1, %v409_v34  ;;  %s352_s23 = scalar_lea.vmem %s1564_s7, %s1420_s26 }
  0x10   : > { %v359_v3 = vrot.slane %v358_v2, 4  ;;  %v382_v24 = vld [vmem:[%s338_s13] sm:$0xff]  ;;  %s347_s20 = scalar_lea.vmem %s1561_s4, %s1248_s17  ;;  %s1367_s30 = smov 2  }
  0x11   : > { %v365_v4 = vsel %vm357_vm0, %v355_v1, 0.0  ;;  %v385_v28 = vld [vmem:[%s343_s16] sm:$0xff] }
  0x12   : > { %v360_v5 = vadd.f32 %v359_v3, %v358_v2  ;;  %v366_v6 = vrot.slane %v365_v4, 4  ;;  %v406_v43 = vld [vmem:[%s347_s20] sm:$0x3]  ;;  %v1365_v3 = vmov 1  }
  0x13   : > { %v411_v46 = vrot.slane %v406_v43, %v410_v39  ;;  %v415_v47 = vrot.slane %v406_v43, %v414_v40 }
  0x14   : > { %v361_v7 = vrot.slane %v360_v5, 2  ;;  %v367_v8 = vadd.f32 %v366_v6, %v365_v4  ;;  %v1253_v6 = vld [vmem:[%s1562_s5 + $0x4] sm:$0xf] }
  0x16   : > { %v362_v9 = vadd.f32 %v361_v7, %v360_v5  ;;  %v368_v10 = vrot.slane %v367_v8, 2  ;;  %v1476_v7 = vand.u32 127, %v408_v30  ;;  %v494_v30 = vld [vmem:[%s1562_s5] sm:$0xf] }
  0x18   : > { %v363_v11 = vrot.slane %v362_v9, 1  ;;  %v369_v12 = vadd.f32 %v368_v10, %v367_v8  ;;  %v447_v8 = vadd.s32 128, %v1476_v7  ;;  %vm489_vm8 = vcmp.lt.s32.totalorder %v1476_v7, 1 }
  0x19   : > { %vm702_vm15 = vcmp.lt.s32.totalorder %v1476_v7, 2 }
  0x1a   : > { %v364_v13 = vadd.f32 %v363_v11, %v362_v9  ;;  %v370_v14 = vrot.slane %v369_v12, 1  ;;  %v1479_v9 = vmul.u32.u64.low 2863311531, %v447_v8  ;;  %v1480_v10 = vmul.u32.u64.high 2863311531, %v447_v8, %v1479_v9 }
  0x1c   : > { %v371_v16 = vadd.f32 %v370_v14, %v369_v12  ;;  %v373_v17 = vmul.f32 0.25, %v364_v13  ;;  %v1483_v11 = vmul.u32.u64.low 2863311531, %v1476_v7  ;;  %v1484_v12 = vmul.u32.u64.high 2863311531, %v1476_v7, %v1483_v11 }
  0x1d   : > { %v465_v13 = vshrl.u32 %v1480_v10, 3 }
  0x1e   : > { %v374_v19 = vmul.f32 0.25, %v371_v16  ;;  %v377_v20 = vmul.f32 %v375_v15, %v373_v17  ;;  %v454_v14 = vshrl.u32 %v1484_v12, 3 }
  0x1f   : > { %v466_v15 = vmul.u32 12, %v465_v13 }
  0x20   : > { %v378_v21 = vmul.f32 %v376_v18, %v374_v19  ;;  %v455_v16 = vmul.u32 12, %v454_v14  ;;  %v1264_v14 = vld [vmem:[%s1562_s5 + $0x8] sm:$0xf] }
  0x21   : > { %v467_v17 = vsub.s32 %v447_v8, %v466_v15 }
  0x22   : > { %v379_v22 = vadd.f32 %v378_v21, %v377_v20  ;;  %v456_v18 = vsub.s32 %v1476_v7, %v455_v16 }
  0x23   : > { %vm471_vm2 = vcmp.ne.s32.totalorder %v467_v17, 0  ;;  %vm473_vm3 = vcmp.lt.s32.totalorder %v467_v17, 0  ;;  %v477_v19 = vadd.s32 12, %v467_v17 }
  0x24   : > { %380 = vadd.xlane.f32.xlu0 %v379_v22  ;;  %vm470_vm4 = vcmp.ne.s32.totalorder %v456_v18, 0  ;;  %vm472_vm5 = vcmp.lt.s32.totalorder %v456_v18, 0  ;;  %vm475_vm6 = vmand %vm473_vm3, %vm471_vm2  ;;  %v476_v20 = vadd.s32 12, %v456_v18 }
  0x25   : > { %vm474_vm7 = vmand %vm472_vm5, %vm470_vm4  ;;  %v1489_v22 = vsel %vm475_vm6, %v477_v19, %v467_v17 }
  0x26   : > { %vm481_vm9 = vcmp.ge.s32.totalorder %v1489_v22, 1  ;;  %vm697_vm3 = vcmp.ge.s32.totalorder %v1489_v22, 2 }
  0xad   : > { %v381_v25 = vpop.xlane.xlu0 %380 }
  0xae   : > { %v383_v26 = vadd.f32 %v382_v24, %v381_v25  ;;  %v1491_v24 = vsel %vm474_vm7, %v476_v20, %v456_v18 }
  0xaf   : > { %vm480_vm10 = vcmp.ge.s32.totalorder %v1491_v24, 1  ;;  %vm696_vm2 = vcmp.ge.s32.totalorder %v1491_v24, 2 }
  0xb0   : > { %v384_v27 = vmax.f32 %v383_v26, 0.0 }
  0xb2   : > { %389 = vperm.xlu0 %1314, %v384_v27  }
  0xb6   : > { %1321 = vset.pattern.permute.xlu0 %v1365_v3 }
 0x12d   : > { %v390_v31 = vpop.permute.xlu0 %389 }
 0x12e   : > { %v392_v32 = vmul.f32 %v390_v31, %v385_v28  ;;  %v393_v33 = vmul.f32 %v390_v31, %v386_v29 }
 0x130   : > { %v394_v35 = vrot.slane %v392_v32, 4  ;;  %v400_v36 = vrot.slane %v393_v33, 4 }
 0x132   : > { %v395_v37 = vadd.f32 %v394_v35, %v392_v32  ;;  %v401_v38 = vadd.f32 %v400_v36, %v393_v33 }
 0x134   : > { %v396_v41 = vrot.slane %v395_v37, 2  ;;  %v402_v42 = vrot.slane %v401_v38, 2 }
 0x136   : > { %v397_v44 = vadd.f32 %v396_v41, %v395_v37  ;;  %v403_v45 = vadd.f32 %v402_v42, %v401_v38 }
 0x138   : > { %v398_v48 = vrot.slane %v397_v44, 1  ;;  %v404_v49 = vrot.slane %v403_v45, 1 }
 0x13a   : > { %v399_v50 = vadd.f32 %v398_v48, %v397_v44  ;;  %v405_v51 = vadd.f32 %v404_v49, %v403_v45 }
 0x13c   : > { %v418_v52 = vadd.f32 %v411_v46, %v399_v50  ;;  %v419_v53 = vadd.f32 %v415_v47, %v405_v51 }
 0x13e   : > { %v1251_v54 = vmul.f32 -1.442695, %v418_v52  ;;  %v1252_v55 = vmul.f32 -1.442695, %v419_v53 }
 0x140   : > { %1323 = vpow2.f32 %v1251_v54 }
 0x141   : > { %1325 = vpow2.f32 %v1252_v55 }
 0x14d   : > { %v1324_v56 = vpop.eup %1323 }
 0x14e   : > { %v1326_v57 = vpop.eup %1325  ;;  %v426_v58 = vadd.f32 1.0, %v1324_v56 }
 0x14f   : > { %v427_v59 = vadd.f32 1.0, %v1326_v57 }
 0x150   : > { %1327 = vrcp.f32 %v426_v58 }
 0x151   : > { %1329 = vrcp.f32 %v427_v59 }
 0x15d   : > { %v1328_v60 = vpop.eup %1327 }
 0x15e   : > { %v1330_v62 = vpop.eup %1329  ;;  %v435_v63 = vrot.slane %v1328_v60, %v410_v39 }
 0x15f   : > { %v439_v1 = vrot.slane %v1330_v62, %v410_v39 }
 0x161   : > { %v442_v2 = vcombine.low %v435_v63, %v439_v1 }
 0x163   : > { %v1454_v4 = vmul.f32 %v442_v2, %v1426_v0  ;;  %v656_v0 = vld [vmem:[%s1563_s6] sm:$0xf] }
 0x165   : > { %485 = vrot.lane.b32.xlu1 %v1454_v4, %s1366_s21  ;;  %v1459_v5 = vcombine.high %v1454_v4, %v1454_v4 }
 0x167   : > { %1254 = vmatprep.subr.msk.mxu0 %vm357_vm0, %v1459_v5 }
 0x168   : > { %1255 = vmatpush1.msk.msra.mxu0 %vm357_vm0, %v1454_v4 }
 0x169   : > { %487 = vrot.lane.b32.xlu1 %v1459_v5, %s1366_s21  ;;  %1256 = vmatmul.mubr.msk.f32.vlgmr.msra.gmra.mxu0 %vm497_vm1, %v1253_v6  ;;  %v1265_v6 = vld [vmem:[%s1562_s5 + $0xc] sm:$0xf] }
 0x16a   : > { %784 = vmatprep.mubr.f32.mxu0 %v1364_v61 }
 0x16d   : > { %659 = vperm.xlu1 %1315, %v656_v0  }
 0x171   : > { %1316 = vset.pattern.permute.xlu1 %v1365_v3 }
 0x172   : > { %665 = vperm.xlu1 %1316, %v656_v0   ;;  %v1272_v0 = vld [vmem:[%s1563_s6 + $0x4] sm:$0xf] }
 0x176   : > { %1317 = vset.pattern.permute.xlu1 %v1363_v23 }
 0x1d7   : > { %v486_v21 = vpop.permute.xlu1 %485 }
 0x1db   : > { %v488_v25 = vpop.permute.xlu1 %487 }
 0x1dc   : > { %v491_v26 = vsel %vm489_vm8, %v488_v25, %v486_v21  ;;  %v490_v27 = vsel %vm489_vm8, %v486_v21, %v488_v25  ;;  %vm918_vm8 = vcmp.lt.s32.totalorder %v1476_v7, 3 }
 0x1dd   : > { %v493_v28 = vsel %vm481_vm9, %v490_v27, 0.0  ;;  %v492_v29 = vsel %vm480_vm10, %v491_v26, 0.0  ;;  %vm912_vm9 = vcmp.ge.s32.totalorder %v1491_v24, 3  ;;  %vm913_vm10 = vcmp.ge.s32.totalorder %v1489_v22, 3 }
 0x1de   : > { %1257 = vmatprep.subr.msk.mxu1 %vm357_vm0, %v493_v28 }
 0x1df   : > { %1258 = vmatpush1.msk.msra.mxu1 %vm357_vm0, %v492_v29 }
 0x1e0   : > { %1259 = vmatmul.mubr.msk.f32.vlgmr.msra.gmra.mxu1 %vm497_vm1, %v494_v30 }
 0x1e1   : > { %864 = vmatprep.mubr.f32.mxu1 %v1364_v61 }
 0x1e8   : > { %v660_v31 = vpop.permute.xlu1 %659 }
 0x1ed   : > { %v666_v35 = vpop.permute.xlu1 %665 }
 0x229   : > { %v571_v32 = vpop.f32.mrf.mxu0 }
 0x22b   : > { %v573_v36 = vpop.f32.mrf.mxu0 }
 0x2a0   : > { %v651_v33 = vpop.f32.mrf.mxu1 }
 0x2a1   : > { %v652_v34 = vadd.f32 %v651_v33, %v571_v32 }
 0x2a2   : > { %v653_v37 = vpop.f32.mrf.mxu1 }
 0x2a3   : > { %v662_v38 = vmul.f32 %v660_v31, %v652_v34  ;;  %v654_v39 = vadd.f32 %v653_v37, %v573_v36 }
 0x2a5   : > { %v663_v40 = vmul.f32 %v660_v31, %v654_v39  ;;  %v668_v41 = vadd.f32 %v666_v35, %v662_v38 }
 0x2a7   : > { %v669_v42 = vadd.f32 %v666_v35, %v663_v40  ;;  %v672_v43 = vmin.f32 %v668_v41, 0.0  ;;  %vm670_vm11 = vcmp.gt.f32.partialorder %v668_v41, 0.0 }
 0x2a9   : > { %v673_v44 = vmin.f32 %v669_v42, 0.0  ;;  %v674_v45 = vmul.f32 1.442695, %v672_v43  ;;  %vm671_vm12 = vcmp.gt.f32.partialorder %v669_v42, 0.0 }
 0x2ab   : > { %1331 = vpow2.f32 %v674_v45  ;;  %v676_v46 = vmul.f32 1.442695, %v673_v44 }
 0x2ad   : > { %1333 = vpow2.f32 %v676_v46 }
 0x2b8   : > { %v1332_v47 = vpop.eup %1331 }
 0x2b9   : > { %v1260_v48 = vadd.f32 -1.0, %v1332_v47 }
 0x2ba   : > { %v1334_v49 = vpop.eup %1333 }
 0x2bb   : > { %v1261_v50 = vadd.f32 -1.0, %v1334_v49  ;;  %v680_v51 = vsel %vm670_vm11, %v668_v41, %v1260_v48 }
 0x2bc   : > { %v682_v52 = vadd.f32 %v680_v51, %v1454_v4  ;;  %v1285_v51 = vld [vmem:[%s1563_s6 + $0x8] sm:$0xf] }
 0x2bd   : > { %v681_v53 = vsel %vm671_vm12, %v669_v42, %v1261_v50  ;;  %v1278_v50 = vld [vmem:[%s1562_s5 + $0x14] sm:$0xf] }
 0x2be   : > { %v683_v54 = vadd.f32 %v681_v53, %v1459_v5  ;;  %v686_v55 = vmin.f32 %v682_v52, 0.0  ;;  %vm684_vm13 = vcmp.gt.f32.partialorder %v682_v52, 0.0 }
 0x2c0   : > { %v687_v56 = vmin.f32 %v683_v54, 0.0  ;;  %v688_v57 = vmul.f32 1.442695, %v686_v55  ;;  %vm685_vm14 = vcmp.gt.f32.partialorder %v683_v54, 0.0 }
 0x2c2   : > { %1335 = vpow2.f32 %v688_v57  ;;  %v690_v58 = vmul.f32 1.442695, %v687_v56 }
 0x2c4   : > { %1337 = vpow2.f32 %v690_v58  ;;  %v1277_v58 = vld [vmem:[%s1562_s5 + $0x10] sm:$0xf] }
 0x2cf   : > { %v1336_v59 = vpop.eup %1335 }
 0x2d0   : > { %v1262_v60 = vadd.f32 -1.0, %v1336_v59 }
 0x2d1   : > { %v1338_v62 = vpop.eup %1337 }
 0x2d2   : > { %v694_v63 = vsel %vm684_vm13, %v682_v52, %v1262_v60  ;;  %v1263_v1 = vadd.f32 -1.0, %v1338_v62 }
 0x2d3   : > { %698 = vrot.lane.b32.xlu1 %v694_v63, %s1367_s30 }
 0x2d4   : > { %v695_v2 = vsel %vm685_vm14, %v683_v54, %v1263_v1 }
 0x2d5   : > { %1266 = vmatprep.subr.msk.mxu0 %vm357_vm0, %v695_v2 }
 0x2d6   : > { %1267 = vmatpush1.msk.msra.mxu0 %vm357_vm0, %v694_v63 }
 0x2d7   : > { %700 = vrot.lane.b32.xlu1 %v695_v2, %s1367_s30  ;;  %1268 = vmatmul.mubr.msk.f32.vlgmr.msra.gmra.mxu0 %vm497_vm1, %v1265_v6 }
 0x2d8   : > { %1000 = vmatprep.mubr.f32.mxu0 %v1364_v61 }
 0x2db   : > { %875 = vperm.xlu1 %1317, %v1272_v0  }
 0x2df   : > { %1318 = vset.pattern.permute.xlu1 %v1365_v3 }
 0x2e0   : > { %881 = vperm.xlu1 %1318, %v1272_v0  }
 0x2e4   : > { %1319 = vset.pattern.permute.xlu1 %v1363_v23 }
 0x345   : > { %v699_v8 = vpop.permute.xlu1 %698 }
 0x349   : > { %v701_v9 = vpop.permute.xlu1 %700 }
 0x34a   : > { %v703_v10 = vsel %vm702_vm15, %v699_v8, %v701_v9  ;;  %v704_v11 = vsel %vm702_vm15, %v701_v9, %v699_v8 }
 0x34b   : > { %v705_v12 = vsel %vm696_vm2, %v704_v11, 0.0  ;;  %v706_v13 = vsel %vm697_vm3, %v703_v10, 0.0 }
 0x34c   : > { %1269 = vmatprep.subr.msk.mxu1 %vm357_vm0, %v706_v13 }
 0x34d   : > { %1270 = vmatpush1.msk.msra.mxu1 %vm357_vm0, %v705_v12 }
 0x34e   : > { %1271 = vmatmul.mubr.msk.f32.vlgmr.msra.gmra.mxu1 %vm497_vm1, %v1264_v14 }
 0x34f   : > { %1080 = vmatprep.mubr.f32.mxu1 %v1364_v61 }
 0x356   : > { %v876_v23 = vpop.permute.xlu1 %875 }
 0x35b   : > { %v882_v18 = vpop.permute.xlu1 %881 }
 0x397   : > { %v786_v15 = vpop.f32.mrf.mxu0 }
 0x399   : > { %v788_v19 = vpop.f32.mrf.mxu0 }
 0x40e   : > { %v866_v16 = vpop.f32.mrf.mxu1 }
 0x40f   : > { %v867_v17 = vadd.f32 %v866_v16, %v786_v15 }
 0x410   : > { %v868_v20 = vpop.f32.mrf.mxu1 }
 0x411   : > { %v878_v21 = vmul.f32 %v876_v23, %v867_v17  ;;  %v869_v25 = vadd.f32 %v868_v20, %v788_v19 }
 0x413   : > { %v879_v26 = vmul.f32 %v876_v23, %v869_v25  ;;  %v884_v27 = vadd.f32 %v882_v18, %v878_v21 }
 0x415   : > { %v885_v28 = vadd.f32 %v882_v18, %v879_v26  ;;  %v888_v29 = vmin.f32 %v884_v27, 0.0  ;;  %vm886_vm4 = vcmp.gt.f32.partialorder %v884_v27, 0.0 }
 0x417   : > { %v889_v30 = vmin.f32 %v885_v28, 0.0  ;;  %v890_v31 = vmul.f32 1.442695, %v888_v29  ;;  %vm887_vm5 = vcmp.gt.f32.partialorder %v885_v28, 0.0 }
 0x419   : > { %1339 = vpow2.f32 %v890_v31  ;;  %v892_v32 = vmul.f32 1.442695, %v889_v30 }
 0x41b   : > { %1341 = vpow2.f32 %v892_v32 }
 0x426   : > { %v1340_v33 = vpop.eup %1339 }
 0x427   : > { %v1273_v61 = vadd.f32 -1.0, %v1340_v33 }
 0x428   : > { %v1342_v34 = vpop.eup %1341 }
 0x429   : > { %v1274_v35 = vadd.f32 -1.0, %v1342_v34  ;;  %v896_v36 = vsel %vm886_vm4, %v884_v27, %v1273_v61 }
 0x42a   : > { %v898_v37 = vadd.f32 %v896_v36, %v1454_v4 }
 0x42b   : > { %v897_v38 = vsel %vm887_vm5, %v885_v28, %v1274_v35 }
 0x42c   : > { %v899_v39 = vadd.f32 %v897_v38, %v1459_v5  ;;  %v902_v40 = vmin.f32 %v898_v37, 0.0  ;;  %vm900_vm6 = vcmp.gt.f32.partialorder %v898_v37, 0.0 }
 0x42e   : > { %v903_v41 = vmin.f32 %v899_v39, 0.0  ;;  %v904_v42 = vmul.f32 1.442695, %v902_v40  ;;  %vm901_vm7 = vcmp.gt.f32.partialorder %v899_v39, 0.0 }
 0x430   : > { %1343 = vpow2.f32 %v904_v42  ;;  %v906_v43 = vmul.f32 1.442695, %v903_v41 }
 0x432   : > { %1345 = vpow2.f32 %v906_v43 }
 0x43d   : > { %v1344_v44 = vpop.eup %1343 }
 0x43e   : > { %v1275_v45 = vadd.f32 -1.0, %v1344_v44 }
 0x43f   : > { %v1346_v46 = vpop.eup %1345 }
 0x440   : > { %v910_v47 = vsel %vm900_vm6, %v898_v37, %v1275_v45  ;;  %v1276_v48 = vadd.f32 -1.0, %v1346_v46 }
 0x441   : > { %914 = vrot.lane.b32.xlu1 %v910_v47, %s1368_s14 }
 0x442   : > { %v911_v49 = vsel %vm901_vm7, %v899_v39, %v1276_v48 }
 0x443   : > { %1279 = vmatprep.subr.msk.mxu0 %vm357_vm0, %v911_v49 }
 0x444   : > { %1280 = vmatpush1.msk.msra.mxu0 %vm357_vm0, %v910_v47 }
 0x445   : > { %916 = vrot.lane.b32.xlu1 %v911_v49, %s1368_s14  ;;  %1281 = vmatmul.mubr.msk.f32.vlgmr.msra.gmra.mxu0 %vm497_vm1, %v1278_v50 }
 0x449   : > { %1091 = vperm.xlu1 %1319, %v1285_v51  }
 0x44d   : > { %1320 = vset.pattern.permute.xlu1 %v1365_v3 }
 0x44e   : > { %1097 = vperm.xlu1 %1320, %v1285_v51  }
 0x4b3   : > { %v915_v52 = vpop.permute.xlu1 %914 }
 0x4b7   : > { %v917_v53 = vpop.permute.xlu1 %916 }
 0x4b8   : > { %v919_v54 = vsel %vm918_vm8, %v915_v52, %v917_v53  ;;  %v920_v55 = vsel %vm918_vm8, %v917_v53, %v915_v52 }
 0x4b9   : > { %v921_v56 = vsel %vm912_vm9, %v920_v55, 0.0  ;;  %v922_v57 = vsel %vm913_vm10, %v919_v54, 0.0 }
 0x4ba   : > { %1282 = vmatprep.subr.msk.mxu1 %vm357_vm0, %v922_v57 }
 0x4bb   : > { %1283 = vmatpush1.msk.msra.mxu1 %vm357_vm0, %v921_v56 }
 0x4bc   : > { %1284 = vmatmul.mubr.msk.f32.vlgmr.msra.gmra.mxu1 %vm497_vm1, %v1277_v58 }
 0x4c4   : > { %v1092_v3 = vpop.permute.xlu1 %1091 }
 0x4c9   : > { %v1098_v22 = vpop.permute.xlu1 %1097 }
 0x505   : > { %v1002_v7 = vpop.f32.mrf.mxu0 }
 0x507   : > { %v1004_v60 = vpop.f32.mrf.mxu0 }
 0x57c   : > { %v1082_v24 = vpop.f32.mrf.mxu1 }
 0x57d   : > { %v1083_v59 = vadd.f32 %v1082_v24, %v1002_v7 }
 0x57e   : > { %v1084_v62 = vpop.f32.mrf.mxu1 }
 0x57f   : > { %v1085_v63 = vadd.f32 %v1084_v62, %v1004_v60  ;;  %v1094_v1 = vmul.f32 %v1092_v3, %v1083_v59 }
 0x581   : > { %v1095_v2 = vmul.f32 %v1092_v3, %v1085_v63  ;;  %v1100_v6 = vadd.f32 %v1098_v22, %v1094_v1 }
 0x583   : > { %v1101_v0 = vadd.f32 %v1098_v22, %v1095_v2  ;;  %v1104_v8 = vmin.f32 %v1100_v6, 0.0  ;;  %vm1102_vm0 = vcmp.gt.f32.partialorder %v1100_v6, 0.0 }
 0x585   : > { %v1105_v9 = vmin.f32 %v1101_v0, 0.0  ;;  %v1106_v10 = vmul.f32 1.442695, %v1104_v8  ;;  %vm1103_vm1 = vcmp.gt.f32.partialorder %v1101_v0, 0.0 }
 0x587   : > { %1347 = vpow2.f32 %v1106_v10  ;;  %v1108_v11 = vmul.f32 1.442695, %v1105_v9 }
 0x589   : > { %1349 = vpow2.f32 %v1108_v11 }
 0x594   : > { %v1348_v12 = vpop.eup %1347 }
 0x595   : > { %v1286_v13 = vadd.f32 -1.0, %v1348_v12 }
 0x596   : > { %v1350_v14 = vpop.eup %1349 }
 0x597   : > { %v1287_v23 = vadd.f32 -1.0, %v1350_v14  ;;  %v1112_v15 = vsel %vm1102_vm0, %v1100_v6, %v1286_v13 }
 0x598   : > { %v1114_v16 = vadd.f32 %v1112_v15, %v1454_v4 }
 0x599   : > { %v1113_v17 = vsel %vm1103_vm1, %v1101_v0, %v1287_v23 }
 0x59a   : > { %v1115_v18 = vadd.f32 %v1113_v17, %v1459_v5  ;;  %v1118_v19 = vmin.f32 %v1114_v16, 0.0  ;;  %vm1116_vm11 = vcmp.gt.f32.partialorder %v1114_v16, 0.0 }
 0x59c   : > { %v1119_v20 = vmin.f32 %v1115_v18, 0.0  ;;  %v1120_v21 = vmul.f32 1.442695, %v1118_v19  ;;  %vm1117_vm12 = vcmp.gt.f32.partialorder %v1115_v18, 0.0 }
 0x59e   : > { %1351 = vpow2.f32 %v1120_v21  ;;  %v1122_v25 = vmul.f32 1.442695, %v1119_v20 }
 0x5a0   : > { %1353 = vpow2.f32 %v1122_v25 }
 0x5ab   : > { %v1352_v26 = vpop.eup %1351 }
 0x5ac   : > { %v1288_v27 = vadd.f32 -1.0, %v1352_v26 }
 0x5ad   : > { %v1354_v28 = vpop.eup %1353 }
 0x5ae   : > { %v1289_v29 = vadd.f32 -1.0, %v1354_v28  ;;  %v1126_v4 = vsel %vm1116_vm11, %v1114_v16, %v1288_v27 }
 0x5b0   : > { %v1127_v30 = vsel %vm1117_vm12, %v1115_v18, %v1289_v29 }
 0x5b1   : > { %v1130_v31 = vcombine.low %v1126_v4, %v1127_v30 }
 0x5b3   : > { %1132 = vst [vmem:[%s352_s23] sm:$0xff] %v1130_v31 }
 0x5b4 PF: > { %s17_s24 = sadd.s32 1, %s1361_s24  }
 0x5b5   : > { %p14_p4 = scmp.ge.s32.totalorder %s17_s24, 4  }
 0x5b7   :  { %16 = sbr.rel (!%p14_p4) target bundleno = 1 (0x1), region = 97 }

</bundles_post_ra>
